<compile_context>
chip_gen: v6e
topology: v6e:2x2x1
jax: 0.10.0
libtpu: 0.0.40
codegen_flags: <defaults>
</compile_context>

<pallas_src>
import functools

import numpy as np
import jax
import jax.numpy as jnp
from jax.experimental import pallas as pl
from jax.experimental.pallas import tpu as pltpu


def _round_up(a, b):
    return ((a + b - 1) // b) * b


# ----------------------------------------------------------------------------
# Kernel: one (tm, tn) output tile, accumulated over the K grid axis.
#   has_bias:     bias row (1, tn) is an extra input, folded into the k==0 init.
#   use_scratch:  accumulate in an f32 VMEM scratch (needed for non-f32 output);
#                 otherwise accumulate directly in the resident f32 output block.
# ----------------------------------------------------------------------------
def _linear_kernel(x_ref, w_ref, *refs, has_bias: bool, use_scratch: bool):
    idx = 0
    b_ref = None
    if has_bias:
        b_ref = refs[idx]
        idx += 1
    o_ref = refs[idx]
    idx += 1
    acc_ref = refs[idx] if use_scratch else o_ref

    k = pl.program_id(2)

    @pl.when(k == 0)
    def _init():
        if has_bias:
            acc_ref[...] = jnp.broadcast_to(
                b_ref[...].astype(acc_ref.dtype), acc_ref.shape)
        else:
            acc_ref[...] = jnp.zeros_like(acc_ref)

    acc_ref[...] += jnp.dot(x_ref[...], w_ref[...],
                            preferred_element_type=jnp.float32)

    if use_scratch:
        @pl.when(k == pl.num_programs(2) - 1)
        def _store():
            o_ref[...] = acc_ref[...].astype(o_ref.dtype)


# ----------------------------------------------------------------------------
# Wrapper: y = x @ w_t + bias, with w_t = W.T already laid out as (K, N) and
# already in the MXU compute dtype (prepared once, see AutoSplitLinearPallas).
# ----------------------------------------------------------------------------
def linear_pallas(x, w_t, bias_row=None, *, out_dtype=None,
                  block_m=512, block_n=512, block_k=1024):
    *lead, K = x.shape
    K_w, N = w_t.shape
    assert K == K_w, f"in_features mismatch: {K} vs {K_w}"
    M = int(np.prod(lead)) if lead else 1

    out_dtype = jnp.dtype(out_dtype if out_dtype is not None else x.dtype)
    compute_dtype = jnp.dtype(w_t.dtype)

    x2 = x.reshape(M, K).astype(compute_dtype)

    # ---------------- tile selection ----------------
    block_n = max(128, (block_n // 128) * 128)
    block_k = max(128, (block_k // 128) * 128)
    pack = {1: 32, 2: 16, 4: 8}[compute_dtype.itemsize]   # sublane pack size

    # K axis: tile only if K is a clean multiple of 128 and larger than block_k;
    # otherwise use a full-extent block (exempt from the (8,128) rule, no pad).
    if K % 128 == 0 and K > block_k:
        tk = block_k
        while K % tk:
            tk -= 128
    else:
        tk = K

    # N axis: same policy (keeps the output lane-dense when tiled).
    if N % 128 == 0 and N > block_n:
        tn = block_n
        while N % tn:
            tn -= 128
    else:
        tn = N

    # M axis: full-extent for skinny M (no padding); otherwise pick the tile
    # from a small candidate set that minimizes padding waste.
    if M <= max(block_m, pack):
        tm = M
        Mp = M
    else:
        cands = [c for c in (block_m, 256, 128) if c >= pack and c % pack == 0]
        tm = min(cands, key=lambda c: (_round_up(M, c) - M, -c))
        Mp = _round_up(M, tm)
        if Mp != M:
            x2 = jnp.pad(x2, ((0, Mp - M), (0, 0)))

    has_bias = bias_row is not None
    use_scratch = out_dtype != jnp.float32

    grid = (Mp // tm, N // tn, K // tk)

    in_specs = [
        pl.BlockSpec((tm, tk), lambda i, j, k: (i, k)),   # activations
        pl.BlockSpec((tk, tn), lambda i, j, k: (k, j)),   # weight, (K, N) layout
    ]
    args = [x2, w_t]
    if has_bias:
        in_specs.append(pl.BlockSpec((1, tn), lambda i, j, k: (0, j)))
        args.append(bias_row)

    scratch_shapes = [pltpu.VMEM((tm, tn), jnp.float32)] if use_scratch else []

    # VMEM budget: double-buffered inputs + double-buffered output (+ scratch).
    csz, osz = compute_dtype.itemsize, out_dtype.itemsize
    vmem_needed = 2 * (tm * tk + tk * tn) * csz + 2 * tm * tn * osz
    if use_scratch:
        vmem_needed += tm * tn * 4
    if has_bias:
        vmem_needed += 2 * tn * 4
    # >= 32 MiB lifts v5e's 16 MiB scoped default; <= 48 MiB keeps headroom on
    # v7x's 64 MiB physical VMEM.
    vmem_limit = int(min(48 << 20, max(32 << 20, (vmem_needed * 3) // 2)))

    cost = pl.CostEstimate(
        flops=2 * M * N * K,
        transcendentals=0,
        bytes_accessed=(M * K * csz + K * N * csz + M * N * osz
                        + (N * 4 if has_bias else 0)),
    )

    kernel = functools.partial(_linear_kernel, has_bias=has_bias,
                               use_scratch=use_scratch)

    out = pl.pallas_call(
        kernel,
        out_shape=jax.ShapeDtypeStruct((Mp, N), out_dtype),
        grid_spec=pltpu.PrefetchScalarGridSpec(
            num_scalar_prefetch=0,
            grid=grid,
            in_specs=in_specs,
            out_specs=pl.BlockSpec((tm, tn), lambda i, j, k: (i, j)),
            scratch_shapes=scratch_shapes,
        ),
        compiler_params=pltpu.CompilerParams(
            dimension_semantics=("parallel", "parallel", "arbitrary"),
            vmem_limit_bytes=vmem_limit),
        cost_estimate=cost,
    )(*args)

    if Mp != M:
        out = out[:M]
    return out.reshape(*lead, N)


# ----------------------------------------------------------------------------
# Module-style wrapper: weight transpose / cast done ONCE at construction.
# ----------------------------------------------------------------------------
class AutoSplitLinearPallas:
    """Pallas-TPU forward of AutoSplitLinear: y = x @ W.T + b.

    The torch 512-channel split (split_linear / split_linear_input) is a
    device workaround; numerically it is exactly x @ W.T + b, implemented
    here as one tiled MXU matmul.
    """

    def __init__(self, weight, bias=None, compute_dtype=jnp.bfloat16):
        weight = jnp.asarray(weight)
        self.out_features, self.in_features = weight.shape
        # One-time prep: (N, K) -> (K, N) so the kernel output is lane-dense
        # and there is no per-call transpose; cast once for the bf16 MXU path.
        self.w_t = weight.T.astype(compute_dtype)
        self.bias_row = (None if bias is None
                         else jnp.asarray(bias, jnp.float32).reshape(1, -1))

    def __call__(self, x, out_dtype=None):
        return linear_pallas(x, self.w_t, self.bias_row, out_dtype=out_dtype)


def auto_split_linear(x, weight, bias=None, compute_dtype=jnp.bfloat16):
    """Functional convenience form (prepares the weight per call; prefer the
    class above so the transpose/cast happens once)."""
    return AutoSplitLinearPallas(weight, bias, compute_dtype)(x)


# ----------------------------------------------------------------------------
# Test / demo
# ----------------------------------------------------------------------------
def _ref(x, w, b):
    out = np.asarray(x).astype(np.float64) @ np.asarray(w).astype(np.float64).T
    if b is not None:
        out = out + np.asarray(b).astype(np.float64)
    return out


def _bf16_round(a):
    return np.asarray(jnp.asarray(a).astype(jnp.bfloat16).astype(jnp.float32))


if __name__ == "__main__":
    key = jax.random.PRNGKey(0)
    keys = jax.random.split(key, 12)

    # Case 1: in_features > 512 ("split_linear" branch), K tiled over 2 steps,
    # f32 output accumulated directly in the resident output block.
    B, S, Cin, Cout = 2, 8, 2048, 768
    x = jax.random.normal(keys[0], (B, S, Cin), jnp.float32)
    w = jax.random.normal(keys[1], (Cout, Cin), jnp.float32) * 0.03
    b = jax.random.normal(keys[2], (Cout,), jnp.float32) * 0.03
    layer = AutoSplitLinearPallas(w, b)
    out = jax.block_until_ready(layer(x))
    assert out.shape == (B, S, Cout)
    ref_bf = _ref(_bf16_round(x), _bf16_round(w), b)          # same bf16 inputs
    np.testing.assert_allclose(np.asarray(out), ref_bf, atol=2e-3, rtol=2e-3)
    np.testing.assert_allclose(np.asarray(out), _ref(x, w, b),  # f32 sanity
                               atol=3e-2, rtol=3e-2)

    # Case 2: in/out features <= 512 (plain nn.Linear branch, same math),
    # non-128-multiple K/N -> full-extent blocks, no padding.
    Cin2, Cout2 = 32, 48
    x2 = jax.random.normal(keys[3], (B, S, Cin2), jnp.float32)
    w2 = jax.random.normal(keys[4], (Cout2, Cin2), jnp.float32) * 0.1
    b2 = jax.random.normal(keys[5], (Cout2,), jnp.float32) * 0.1
    out2 = jax.block_until_ready(AutoSplitLinearPallas(w2, b2)(x2))
    assert out2.shape == (B, S, Cout2)
    ref2 = _ref(_bf16_round(x2), _bf16_round(w2), b2)
    np.testing.assert_allclose(np.asarray(out2), ref2, atol=2e-3, rtol=2e-3)

    # Case 3: bf16 activations, bf16 output (scratch-accumulator path),
    # no bias, K tiled over 2 steps.
    Cin3, Cout3 = 1536, 640
    x3 = jax.random.normal(keys[6], (B, S, Cin3), jnp.float32).astype(jnp.bfloat16)
    w3 = (jax.random.normal(keys[7], (Cout3, Cin3), jnp.float32) * 0.03)
    out3 = jax.block_until_ready(AutoSplitLinearPallas(w3, None)(x3))
    assert out3.shape == (B, S, Cout3) and out3.dtype == jnp.bfloat16
    ref3 = _ref(np.asarray(x3, np.float32), _bf16_round(w3), None)
    np.testing.assert_allclose(np.asarray(out3, np.float32), ref3,
                               atol=2e-2, rtol=2e-2)

    # Case 4: many tokens (M > block_m) -> exercises M tiling + M padding.
    S4, Cin4, Cout4 = 300, 256, 256
    x4 = jax.random.normal(keys[8], (B, S4, Cin4), jnp.float32)
    w4 = jax.random.normal(keys[9], (Cout4, Cin4), jnp.float32) * 0.05
    b4 = jax.random.normal(keys[10], (Cout4,), jnp.float32) * 0.05
    out4 = jax.block_until_ready(AutoSplitLinearPallas(w4, b4)(x4))
    assert out4.shape == (B, S4, Cout4)
    ref4 = _ref(_bf16_round(x4), _bf16_round(w4), b4)
    np.testing.assert_allclose(np.asarray(out4), ref4, atol=2e-3, rtol=2e-3)

    print("KERNEL_OK")
</pallas_src>

<mosaic_0001>
module attributes {stable_mosaic.version = 11 : i64} {
  func.func @_linear_kernel(%arg0: i32, %arg1: i32, %arg2: i32, %arg3: memref<16x1024xbf16, #tpu.memory_space<vmem>>, %arg4: memref<1024x384xbf16, #tpu.memory_space<vmem>>, %arg5: memref<1x384xf32, #tpu.memory_space<vmem>>, %arg6: memref<16x384xf32, #tpu.memory_space<vmem>>) attributes {dimension_semantics = [#tpu.dimension_semantics<parallel>, #tpu.dimension_semantics<parallel>, #tpu.dimension_semantics<arbitrary>], iteration_bounds = array<i64: 1, 2, 2>, scalar_prefetch = 0 : i64, scratch_operands = 0 : i64, tpu.core_type = #tpu.core_type<tc>, window_params = [{transform_indices = @transform_0, window_bounds = array<i64: 16, 1024>}, {transform_indices = @transform_1, window_bounds = array<i64: 1024, 384>}, {transform_indices = @transform_2, window_bounds = array<i64: 1, 384>}, {transform_indices = @transform_3, window_bounds = array<i64: 16, 384>}]} {
    %c0_i32 = arith.constant 0 : i32
    %0 = arith.cmpi eq, %arg2, %c0_i32 : i32
    %1 = arith.extui %0 : i1 to i32
    %c0_i32_0 = arith.constant 0 : i32
    %2 = arith.cmpi ne, %1, %c0_i32_0 : i32
    scf.if %2 {
      %c0_8 = arith.constant 0 : index
      %c0_9 = arith.constant 0 : index
      %9 = vector.load %arg5[%c0_8, %c0_9] : memref<1x384xf32, #tpu.memory_space<vmem>>, vector<1x384xf32>
      %10 = vector.shape_cast %9 : vector<1x384xf32> to vector<1x384xf32>
      %11 = vector.broadcast %10 : vector<1x384xf32> to vector<16x384xf32>
      %c0_10 = arith.constant 0 : index
      %c0_11 = arith.constant 0 : index
      %12 = vector.load %arg6[%c0_10, %c0_11] : memref<16x384xf32, #tpu.memory_space<vmem>>, vector<16x384xf32>
      tpu.vector_store %arg6[%c0_10, %c0_11], %11 {strides = array<i32>} : memref<16x384xf32, #tpu.memory_space<vmem>>, vector<16x384xf32>,
    } else {
    }
    %c0 = arith.constant 0 : index
    %c0_1 = arith.constant 0 : index
    %3 = vector.load %arg6[%c0, %c0_1] : memref<16x384xf32, #tpu.memory_space<vmem>>, vector<16x384xf32>
    %c0_2 = arith.constant 0 : index
    %c0_3 = arith.constant 0 : index
    %4 = vector.load %arg3[%c0_2, %c0_3] : memref<16x1024xbf16, #tpu.memory_space<vmem>>, vector<16x1024xbf16>
    %c0_4 = arith.constant 0 : index
    %c0_5 = arith.constant 0 : index
    %5 = vector.load %arg4[%c0_4, %c0_5] : memref<1024x384xbf16, #tpu.memory_space<vmem>>, vector<1024x384xbf16>
    %cst = arith.constant dense<0.000000e+00> : vector<16x384xf32>
    %6 = tpu.matmul %4, %5, %cst {dimension_numbers = #tpu.dot_dimension_numbers<[1], [0], [0], [1], [0, 0, 1, 1], [], []>} : vector<16x1024xbf16>, vector<1024x384xbf16>, vector<16x384xf32> -> vector<16x384xf32>
    %7 = arith.addf %3, %6 : vector<16x384xf32>
    %c0_6 = arith.constant 0 : index
    %c0_7 = arith.constant 0 : index
    %8 = vector.load %arg6[%c0_6, %c0_7] : memref<16x384xf32, #tpu.memory_space<vmem>>, vector<16x384xf32>
    tpu.vector_store %arg6[%c0_6, %c0_7], %7 {strides = array<i32>} : memref<16x384xf32, #tpu.memory_space<vmem>>, vector<16x384xf32>,
    return
  }
  func.func @transform_0(%arg0: i32, %arg1: i32, %arg2: i32) -> (i32, i32) {
    %c0_i32 = arith.constant 0 : i32
    return %arg0, %arg2 : i32, i32
  }
  func.func @transform_1(%arg0: i32, %arg1: i32, %arg2: i32) -> (i32, i32) {
    %c0_i32 = arith.constant 0 : i32
    return %arg2, %arg1 : i32, i32
  }
  func.func @transform_2(%arg0: i32, %arg1: i32, %arg2: i32) -> (i32, i32) {
    %c0_i32 = arith.constant 0 : i32
    %c0_i32_0 = arith.constant 0 : i32
    return %c0_i32, %arg1 : i32, i32
  }
  func.func @transform_3(%arg0: i32, %arg1: i32, %arg2: i32) -> (i32, i32) {
    %c0_i32 = arith.constant 0 : i32
    return %arg0, %arg1 : i32, i32
  }
}

</mosaic_0001>

<bundles_post_ra>
// kernel: tpu_custom_call.1
= control target key start
LH: loop header
LB: loop body
LE: loop exit
PB: predicated region body
PF: predicated region fallthrough
CT: control target
= control target key end

     0   :  { %s3763_s0 = inlined_call_operand.hbm [shape: bf16[16,2048], index: 0, kind: input, shape index: {}]   ;;  %s3764_s1 = inlined_call_operand.hbm [shape: bf16[2048,768], index: 1, kind: input, shape index: {}]   ;;  %s3765_s2 = inlined_call_operand.hbm [shape: f32[1,768], index: 2, kind: input, shape index: {}]   ;;  %s3766_s3 = inlined_call_operand.hbm [shape: f32[16,768], index: 3, kind: output, shape index: {}]  }
   0x1   :  { %3774 = sst [smem:[#allocation20_spill]] %s3763_s0 }
   0x2   :  { %3775 = sst [smem:[#allocation21_spill]] %s3764_s1 }
   0x3   :  { %3776 = sst [smem:[#allocation22_spill]] %s3765_s2 }
   0x4   :  { %3777 = sst [smem:[#allocation23_spill]] %s3766_s3 }
   0x5   :  { %8 = vsyncpa [#allocation3], 0 }
   0x6   :  { %10 = vsyncpa [#allocation3 + $0x1], 0 }
   0x7   :  { %11 = vsyncpa [#allocation6], 0 }
   0x8   :  { %13 = vsyncpa [#allocation6 + $0x1], 0 }
   0x9   :  { %14 = vsyncpa [#allocation4], 0 }
   0xa   :  { %16 = vsyncpa [#allocation4 + $0x1], 0  ;;  %s3154_s12 = smov 0   ;;  %s3156_s13 = smov 0  }
   0xb   :  { %s3158_s14 = smov 0   ;;  %s3160_s15 = smov 0  }
   0xc   :  { %s3162_s16 = smov 0   ;;  %s3164_s17 = smov 0  }
   0xd   :  { %s3166_s18 = smov 0   ;;  %s3168_s19 = smov 0  }
   0xe   :  { %s3170_s20 = smov 0   ;;  %s3172_s21 = smov 0  }
   0xf   :  { %s3174_s22 = smov 0   ;;  %s3176_s23 = smov 0  }
  0x10   :  { %s3178_s24 = smov 0   ;;  %s3180_s25 = smov 0  }
  0x11 LB: > { %3778 = sst [smem:[#allocation13_spill]] %s3087_s17  ;;  %s34_s26 = sadd.s32 1, %s3111_s23  ;;  %s3119_s25 = sphi %s3180_s25, %s22_s25   ;;  %s3115_s24 = sphi %s3178_s24, %s3822_s24   ;;  %s3111_s23 = sphi %s3176_s23, %s3810_s23   ;;  %s3107_s22 = sphi %s3174_s22, %s3821_s22   ;;  %s3103_s21 = sphi %s3172_s21, %s3809_s21   ;;  %s3099_s20 = sphi %s3170_s20, %s3820_s20   ;;  %s3095_s19 = sphi %s3168_s19, %s3819_s19   ;;  %s3091_s18 = sphi %s3166_s18, %s3818_s18   ;;  %s3087_s17 = sphi %s3164_s17, %s3817_s17   ;;  %s3083_s16 = sphi %s3162_s16, %s3816_s16   ;;  %s3079_s15 = sphi %s3160_s15, %s3815_s15   ;;  %s3075_s14 = sphi %s3158_s14, %s3814_s14   ;;  %s3071_s13 = sphi %s3156_s13, %s3813_s13   ;;  %s3067_s12 = sphi %s3154_s12, %s3812_s12  }
  0x12   : > { %3779 = sst [smem:[#allocation14_spill]] %s3103_s21  ;;  %p58_p0 = scmp.eq.s32.totalorder %s3119_s25, 0 }
  0x13   : > { %3780 = sst [smem:[#allocation15_spill]] %s3107_s22  ;;  %p3226_p1 = scmp.ge.s32.totalorder %s34_s26, 2 }
  0x14   : > { %3781 = sst [smem:[#allocation16_spill]] %s3111_s23  ;;  %p85_p2 = scmp.ne.s32.totalorder %s3087_s17, %s3083_s16 }
  0x15   : > { %p91_p3 = scmp.ne.s32.totalorder %s3083_s16, %s3079_s15  ;;  %s3824_s26 = smov (%p3226_p1, %s34_s26), 0 }
  0x16   : > { %3783 = sst [smem:[#allocation17_spill]] %s3824_s26  ;;  %p87_p4 = por %p85_p2, %p58_p0 }
  0x17   : > { %s3243_s29 = ssub.s32 %s3111_s23, %s3824_s26  ;;  %p3771_p5 = scmp.lt.s32.totalorder %s3119_s25, 4 }
  0x18   : > { %p48_p6 = scmp.eq.s32.totalorder %s3243_s29, 0  ;;  %s193_s30 = sand.u32 1, %s3119_s25  }
  0x19   : > { %s195_s4 = sand.u32 1, %s3087_s17   ;;  %p3251_p7 = pnand %p3771_p5, %p87_p4 }
  0x1a   : > { %s2476_s5 = smul.u32 1536, %s195_s4  ;;  %s3785_s1 = sld [smem:[#allocation21_spill]] }
  0x1b   : > { %s199_s7 = smul.u32 3, %s3115_s24  ;;  %s3260_s21 = scalar_lea.sflag [#allocation6], %s193_s30 }
  0x1c   : > { %s2477_s8 = smul.u32 768, %s3111_s23  ;;  %s197_s9 = scalar_lea.vmem [#allocation5], %s2476_s5 }
  0x1d   : > { %s207_s10 = sshll.u32 %s197_s9, 4  ;;  %p2885_p8 = pneg %p3251_p7  ;;  %s208_s10 = int_to_ptr.vmem [resolvable:$true] %s207_s10 }
  0x1e   : > { %s204_s11 = sadd.s32 %s2477_s8, %s199_s7  ;;  %s2896_s4 = scalar_lea.vmem %s208_s10, 24576 }
  0x1f   : > { %s2177_s28 = sshll.u32 %s204_s11, 6  ;;  %p2897_p9 = scmp.ne.s32.totalorder %s208_s10, %s2896_s4 }
  0x20   : > { %s206_s22 = scalar_lea.hbm %s3785_s1, %s2177_s28  ;;  %s3121_s2 = smov [#allocation5]  }
  0x21   : > { %p2899_p10 = pnand %p2897_p9, %p2885_p8  ;;  %s2901_s17 = sshll.u32 %s3121_s2, 4  ;;  %s2902_s17 = int_to_ptr.vmem [resolvable:$false] %s2901_s17 }
  0x22   : > { %s2903_s5 = scalar_lea.vmem %s2902_s17, 49152  ;;  %p2904_p12 = scmp.lt.s32.totalorder %s208_s10, %s2902_s17 }
  0x23   : > { %p2900_p11 = pneg %p2899_p10  ;;  %p2905_p13 = scmp.lt.s32.totalorder %s2903_s5, %s2896_s4 }
  0x25   : > { %p2906_p2 = por %p2905_p13, %p2904_p12 }
  0x27   : > { %p2907_p4 = pnand %p2906_p2, %p2900_p11 }
  0x29   : > { %2910 = shalt.err (!%p2907_p4)
}
  0x2a   : > { %s3122_s7 = smov 384   ;;  %s3123_s2 = smov 192  }
  0x2b   : > { %s3124_s3 = smov 12   ;;  %p2179_p8 = scmp.ge.s32.totalorder %s3119_s25, 1 }
  0x2c   : > { %2496 = dma.hbm_to_vmem [thread:$0]  (!%p3251_p7), %s206_s22, 24576, %s208_s10, %s3260_s21, %s3122_s7, %s3123_s2, %s3124_s3  }
  0x2d   : > { %p234_p9 = scmp.lt.s32.totalorder %s3119_s25, 5  ;;  %s50_s26 = sadd.s32 1, %s3099_s20 }
  0x2e   : > { %s3277_s28 = scalar_select %p48_p6, %s3099_s20, %s50_s26  }
  0x2f   : > { %p3269_p10 = pnand %p2179_p8, %p234_p9  ;;  %p57_p11 = scmp.ne.s32.totalorder %s3099_s20, %s3095_s19 }
  0x30   : > { %3787 = sst [smem:[#allocation18_spill]] %s3277_s28  ;;  %p63_p12 = scmp.ne.s32.totalorder %s3095_s19, %s3091_s18 }
  0x31   : > { %s169_s30 = sand.u32 1, %s3099_s20   ;;  %s2385_s8 = sshll.u32 %s3111_s23, 9 }
  0x32   : > { %p59_p13 = por %p58_p0, %p57_p11  ;;  %s2172_s9 = sshll.u32 %s169_s30, 6 }
  0x33   : > { %s3788_s0 = sld [smem:[#allocation20_spill]]  ;;  %s173_s4 = scalar_lea.vmem [#allocation2], %s2172_s9 }
  0x34   : > { %p3292_p7 = pnand %p3771_p5, %p59_p13  ;;  %s183_s5 = sshll.u32 %s173_s4, 4  ;;  %s184_s5 = int_to_ptr.vmem [resolvable:$true] %s183_s5 }
  0x35   : > { %s170_s7 = scalar_lea.sflag [#allocation3], %s169_s30  ;;  %s2924_s2 = scalar_lea.vmem %s184_s5, 1024 }
  0x36   : > { %p2913_p6 = pneg %p3292_p7  ;;  %p2925_p2 = scmp.ne.s32.totalorder %s184_s5, %s2924_s2 }
  0x37   : > { %s3125_s3 = smov [#allocation2]  }
  0x38   : > { %p2927_p4 = pnand %p2925_p2, %p2913_p6  ;;  %s2929_s26 = sshll.u32 %s3125_s3, 4  ;;  %s2930_s26 = int_to_ptr.vmem [resolvable:$false] %s2929_s26 }
  0x39   : > { %s182_s22 = scalar_lea.hbm %s3788_s0, %s2385_s8  ;;  %s2931_s8 = scalar_lea.vmem %s2930_s26, 2048 }
  0x3a   : > { %p2928_p8 = pneg %p2927_p4  ;;  %p2932_p9 = scmp.lt.s32.totalorder %s184_s5, %s2930_s26 }
  0x3b   : > { %p2933_p11 = scmp.lt.s32.totalorder %s2931_s8, %s2924_s2 }
  0x3d   : > { %p2934_p13 = por %p2933_p11, %p2932_p9 }
  0x3f   : > { %p2935_p5 = pnand %p2934_p13, %p2928_p8 }
  0x41   : > { %2938 = shalt.err (!%p2935_p5)
}
  0x42   : > { %s3126_s11 = smov 1024   ;;  %s3127_s30 = smov 512  }
  0x43   : > { %s3128_s9 = smov 32   ;;  %s3301_s6 = sadd.s32 4294967295, %s3119_s25  }
  0x44   : > { %2493 = dma.hbm_to_vmem [thread:$0]  (!%p3292_p7), %s182_s22, 1024, %s184_s5, %s170_s7, %s3126_s11, %s3127_s30, %s3128_s9  }
  0x45   : > { %s2169_s4 = sadd.s32 4294967294, %s3119_s25   ;;  %s37_s2 = sadd.s32 1, %s3115_s24 }
  0x46   : > { %p64_p5 = scmp.eq.s32.totalorder %s3301_s6, 0  ;;  %s3826_s2 = smov (!%p3226_p1, %s37_s2), %s3115_s24 }
  0x47   : > { %s3791_s10 = sld [smem:[#allocation13_spill]]  ;;  %p39_p2 = scmp.ge.s32.totalorder %s3826_s2, 2 }
  0x48   : > { %p3312_p6 = por %p64_p5, %p63_p12  ;;  %p3319_p7 = por %p91_p3, %p64_p5 }
  0x49   : > { %s104_s5 = sadd.s32 1, %s3075_s14  ;;  %p111_p4 = scmp.ne.s32.totalorder %s3075_s14, %s3071_s13 }
  0x4a   : > { %p117_p8 = scmp.ne.s32.totalorder %s3071_s13, %s3067_s12  ;;  %s3828_s2 = smov (%p39_p2, %s3826_s2), 0 }
  0x4b   : > { %3793 = sst [smem:[#allocation19_spill]] %s3828_s2  ;;  %p3332_p1 = por %p111_p4, %p58_p0 }
  0x4c   : > { %p3339_p3 = por %p117_p8, %p64_p5  ;;  %s74_s27 = ssub.s32 %s3115_s24, %s3828_s2 }
  0x4d   : > { %p143_p12 = scmp.eq.s32.totalorder %s3301_s6, 3  ;;  %s75_s7 = sor.u32 %s74_s27, %s3243_s29 }
  0x4e   : > { %p102_p9 = scmp.eq.s32.totalorder %s74_s27, 0  ;;  %p76_p11 = scmp.eq.s32.totalorder %s75_s7, 0 }
  0x4f   : > { %p3347_p13 = por %p143_p12, %p111_p4  ;;  %s3797_s11 = sadd.s32 1, %s3791_s10 }
  0x50   : > { %s3352_s8 = scalar_select %p102_p9, %s3075_s14, %s104_s5  }
  0x51   : > { %s3830_s10 = smov (!%p76_p11, %s3791_s10), %s3797_s11  ;;  %p149_p0 = scmp.eq.s32.totalorder %s2169_s4, 3 }
  0x52   : > { %s219_s30 = sand.u32 1, %s3075_s14   ;;  %p3798_p5 = scmp.lt.s32.totalorder %s3119_s25, 4 }
  0x53   : > { %s2478_s9 = smul.u32 3, %s219_s30  ;;  %p3371_p4 = por %p149_p0, %p117_p8 }
  0x54   : > { %p3364_p2 = pnand %p3798_p5, %p3332_p1  ;;  %s2386_s5 = smul.u32 48, %s3115_s24 }
  0x55   : > { %s3800_s29 = scalar_select %p3371_p4, 1, 0 }
  0x56   : > { %s3801_s11 = sld [smem:[#allocation22_spill]]  ;;  %s221_s4 = scalar_lea.vmem [#allocation7], %s2478_s9 }
  0x57   : > { %s229_s2 = sshll.u32 %s221_s4, 4  ;;  %p2941_p12 = pneg %p3364_p2  ;;  %s230_s2 = int_to_ptr.vmem [resolvable:$true] %s229_s2 }
  0x58   : > { %s2952_s15 = scalar_lea.vmem %s230_s2, 48  ;;  %s3129_s30 = smov [#allocation7]  }
  0x59   : > { %p2953_p1 = scmp.ne.s32.totalorder %s230_s2, %s2952_s15  ;;  %s2957_s23 = sshll.u32 %s3129_s30, 4  ;;  %s2958_s23 = int_to_ptr.vmem [resolvable:$false] %s2957_s23 }
  0x5a   : > { %s2959_s28 = scalar_lea.vmem %s2958_s23, 96  ;;  %p2960_p8 = scmp.lt.s32.totalorder %s230_s2, %s2958_s23 }
  0x5b   : > { %p2955_p9 = pnand %p2953_p1, %p2941_p12  ;;  %p2961_p0 = scmp.lt.s32.totalorder %s2959_s28, %s2952_s15 }
  0x5c   : > { %s227_s1 = scalar_lea.hbm %s3801_s11, %s2386_s5 }
  0x5d   : > { %p2956_p11 = pneg %p2955_p9  ;;  %p2962_p5 = por %p2961_p0, %p2960_p8 }
  0x5f   : > { %p2963_p4 = pnand %p2962_p5, %p2956_p11 }
  0x61   : > { %2966 = shalt.err (!%p2963_p4)
}
  0x62   : > { %2499 = dma.hbm_to_vmem [thread:$0]  (!%p3364_p2), %s227_s1, 48, %s230_s2, %s3260_s21  }
  0x63   : > { %238 = sbr.rel (%p3269_p10) target bundleno = 554 (0x22a), region = 32  ;;  %s240_s9 = sand.u32 (!%p3269_p10), 1, %s3095_s19  }
  0x64   : > { %s2180_s5 = sshll.u32 (!%p3269_p10), %s240_s9, 6  ;;  %s241_s27 = scalar_lea.sflag (!%p3269_p10), [#allocation3], %s240_s9 }
  0x65   : > { %s3387_s7 = scalar_lea.vmem (!%p3269_p10), [#allocation2], %s2180_s5 }
  0x68   : > { %3050 = dma.done.wait (%p3312_p6), %s241_s27, 1024  }
  0x69   : > { %3052 = vsyncadd (%p3312_p6), %s241_s27, 4294966272  ;;  %s249_s0 = sand.u32 1, %s3301_s6   ;;  %s251_s1 = sand.u32 1, %s3083_s16  }
  0x6a   : > { %s2479_s21 = smul.u32 1536, %s251_s1  ;;  %s250_s23 = scalar_lea.sflag [#allocation6], %s249_s0 }
  0x6c   : > { %s3395_s17 = scalar_lea.vmem [#allocation5], %s2479_s21 }
  0x6d   : > { %3054 = dma.done.wait (%p3319_p7), %s250_s23, 24576  }
  0x6e   : > { %3056 = vsyncadd (%p3319_p7), %s250_s23, 4294942720  ;;  %s3402_s28 = sand.u32 1, %s3071_s13  }
  0x6f   : > { %s2480_s2 = smul.u32 3, %s3402_s28 }
  0x71   : > { %s262_s3 = scalar_lea.vmem [#allocation7], %s2480_s2 }
  0x72   : > { %3058 = dma.done.wait (%p3339_p3), %s250_s23, 48  }
  0x73   : > { %3060 = vsyncadd (%p3339_p3), %s250_s23, 4294967248  ;;  %s2481_s6 = smul.u32 48, %s3402_s28  ;;  %s3802_s4 = sld [smem:[#allocation14_spill]] }
  0x75   : > { %s3410_s11 = scalar_lea.vmem [#allocation8], %s2481_s6 }
  0x79   : > { %p2181_p10 = scmp.ne.s32.totalorder %s3802_s4, 0 }
  0x7b   : > { %306 = sbr.rel (%p2181_p10) target bundleno = 139 (0x8b), region = 48 }
  0x80   : > { %v309_v0 = vlaneseq  ;;  %v307_v2 = vld [vmem:[%s262_s3] sm:$0x7] }
  0x82   : > { %v310_v1 = vshrl.u32 %v309_v0, 7 }
  0x84   : > { %v311_v3 = vsub.s32 0, %v310_v1  ;;  %v315_v4 = vsub.s32 1, %v310_v1  ;;  %v319_v5 = vsub.s32 2, %v310_v1 }
  0x86   : > { %v312_v6 = vrot.slane %v307_v2, %v311_v3  ;;  %v316_v7 = vrot.slane %v307_v2, %v315_v4  ;;  %v320_v8 = vrot.slane %v307_v2, %v319_v5 }
  0x88   : > { %324 = vst [vmem:[%s3410_s11] sm:$0xff] %v312_v6  ;;  %327 = vst [vmem:[%s3410_s11 + $0x18] sm:$0xff] %v312_v6 }
  0x89   : > { %325 = vst [vmem:[%s3410_s11 + $0x8] sm:$0xff] %v316_v7  ;;  %328 = vst [vmem:[%s3410_s11 + $0x20] sm:$0xff] %v316_v7 }
  0x8a   : > { %326 = vst [vmem:[%s3410_s11 + $0x10] sm:$0xff] %v320_v8  ;;  %329 = vst [vmem:[%s3410_s11 + $0x28] sm:$0xff] %v320_v8 }
  0x8b PF: > { %v2627_v9 = vld [vmem:[%s3395_s17 + $0xac] ss:$12 sps:$4 sm:$0xff]   ;;  %v2631_v11 = vld [vmem:[%s3395_s17 + $0xa8] ss:$12 sps:$4 sm:$0xff]   ;;  %v2637_v15 = vld [vmem:[%s3395_s17 + $0x90] ss:$12 sps:$4 sm:$0xff]  }
  0x8c   : > { %v2629_v10 = vld [vmem:[%s3395_s17 + $0x22c] ss:$12 sps:$4 sm:$0xff]   ;;  %1664 = vmatprep.subr.bf16.mxu0 %v2627_v9  ;;  %v2632_v12 = vld [vmem:[%s3395_s17 + $0x228] ss:$12 sps:$4 sm:$0xff]   ;;  %v2638_v16 = vld [vmem:[%s3395_s17 + $0x210] ss:$12 sps:$4 sm:$0xff]  }
  0x8d   : > { %1707 = vmatprep.subr.bf16.mxu1 %v2629_v10  ;;  %v2633_v13 = vld [vmem:[%s3395_s17 + $0x94] ss:$12 sps:$4 sm:$0xff]   ;;  %1665 = vmatpush1.bf16.msra.mxu0 %v2631_v11  ;;  %v2639_v17 = vld [vmem:[%s3395_s17 + $0x7c] ss:$12 sps:$4 sm:$0xff]   ;;  %v2643_v19 = vld [vmem:[%s3395_s17 + $0x78] ss:$12 sps:$4 sm:$0xff]  }
  0x8e   : > { %1708 = vmatpush1.bf16.msra.mxu1 %v2632_v12  ;;  %v2635_v14 = vld [vmem:[%s3395_s17 + $0x214] ss:$12 sps:$4 sm:$0xff]   ;;  %1666 = vmatprep.subr.bf16.mxu0 %v2633_v13  ;;  %v2641_v18 = vld [vmem:[%s3395_s17 + $0x1fc] ss:$12 sps:$4 sm:$0xff]   ;;  %v2644_v20 = vld [vmem:[%s3395_s17 + $0x1f8] ss:$12 sps:$4 sm:$0xff]  }
  0x8f   : > { %1709 = vmatprep.subr.bf16.mxu1 %v2635_v14  ;;  %v2645_v21 = vld [vmem:[%s3395_s17 + $0x64] ss:$12 sps:$4 sm:$0xff]   ;;  %v2649_v23 = vld [vmem:[%s3395_s17 + $0x60] ss:$12 sps:$4 sm:$0xff]   ;;  %v2655_v27 = vld [vmem:[%s3395_s17 + $0x48] ss:$12 sps:$4 sm:$0xff]  }
  0x90   : > { %v2647_v22 = vld [vmem:[%s3395_s17 + $0x1e4] ss:$12 sps:$4 sm:$0xff]   ;;  %v2650_v24 = vld [vmem:[%s3395_s17 + $0x1e0] ss:$12 sps:$4 sm:$0xff]   ;;  %v2656_v28 = vld [vmem:[%s3395_s17 + $0x1c8] ss:$12 sps:$4 sm:$0xff]  }
  0x91   : > { %1667 = vmatpush1.bf16.msra.mxu0 %v2637_v15  ;;  %v2651_v25 = vld [vmem:[%s3395_s17 + $0x4c] ss:$12 sps:$4 sm:$0xff]   ;;  %v2657_v29 = vld [vmem:[%s3395_s17 + $0x34] ss:$12 sps:$4 sm:$0xff]   ;;  %v2661_v31 = vld [vmem:[%s3395_s17 + $0x30] ss:$12 sps:$4 sm:$0xff]  }
  0x92   : > { %1710 = vmatpush1.bf16.msra.mxu1 %v2638_v16  ;;  %1668 = vmatprep.subr.bf16.mxu0 %v2639_v17  ;;  %v2653_v26 = vld [vmem:[%s3395_s17 + $0x1cc] ss:$12 sps:$4 sm:$0xff]   ;;  %v2659_v30 = vld [vmem:[%s3395_s17 + $0x1b4] ss:$12 sps:$4 sm:$0xff]   ;;  %v2662_v32 = vld [vmem:[%s3395_s17 + $0x1b0] ss:$12 sps:$4 sm:$0xff]  }
  0x93   : > { %1711 = vmatprep.subr.bf16.mxu1 %v2641_v18  ;;  %v2663_v33 = vld [vmem:[%s3395_s17 + $0x1c] ss:$12 sps:$4 sm:$0xff]   ;;  %v2667_v35 = vld [vmem:[%s3395_s17 + $0x18] ss:$12 sps:$4 sm:$0xff]   ;;  %v2673_v39 = vld [vmem:[%s3395_s17] ss:$12 sps:$4 sm:$0xff]  }
  0x94   : > { %v2665_v34 = vld [vmem:[%s3395_s17 + $0x19c] ss:$12 sps:$4 sm:$0xff]   ;;  %v2668_v36 = vld [vmem:[%s3395_s17 + $0x198] ss:$12 sps:$4 sm:$0xff]   ;;  %v2674_v40 = vld [vmem:[%s3395_s17 + $0x180] ss:$12 sps:$4 sm:$0xff]  }
  0x95   : > { %1669 = vmatpush1.bf16.msra.mxu0 %v2643_v19  ;;  %v2669_v37 = vld [vmem:[%s3395_s17 + $0x4] ss:$12 sps:$4 sm:$0xff]   ;;  %v2675_v41 = vld [vmem:[%s3395_s17 + $0x16c] ss:$12 sps:$4 sm:$0xff]   ;;  %v2679_v43 = vld [vmem:[%s3395_s17 + $0x168] ss:$12 sps:$4 sm:$0xff]  }
  0x96   : > { %1712 = vmatpush1.bf16.msra.mxu1 %v2644_v20  ;;  %1670 = vmatprep.subr.bf16.mxu0 %v2645_v21  ;;  %v2671_v38 = vld [vmem:[%s3395_s17 + $0x184] ss:$12 sps:$4 sm:$0xff]   ;;  %v2677_v42 = vld [vmem:[%s3395_s17 + $0x2ec] ss:$12 sps:$4 sm:$0xff]   ;;  %v2680_v44 = vld [vmem:[%s3395_s17 + $0x2e8] ss:$12 sps:$4 sm:$0xff]  }
  0x97   : > { %1713 = vmatprep.subr.bf16.mxu1 %v2647_v22  ;;  %v2681_v45 = vld [vmem:[%s3395_s17 + $0x154] ss:$12 sps:$4 sm:$0xff]   ;;  %v2685_v47 = vld [vmem:[%s3395_s17 + $0x150] ss:$12 sps:$4 sm:$0xff]   ;;  %v2691_v51 = vld [vmem:[%s3395_s17 + $0x138] ss:$12 sps:$4 sm:$0xff]  }
  0x98   : > { %v2683_v46 = vld [vmem:[%s3395_s17 + $0x2d4] ss:$12 sps:$4 sm:$0xff]   ;;  %v2686_v48 = vld [vmem:[%s3395_s17 + $0x2d0] ss:$12 sps:$4 sm:$0xff]   ;;  %v2692_v52 = vld [vmem:[%s3395_s17 + $0x2b8] ss:$12 sps:$4 sm:$0xff]  }
  0x99   : > { %1671 = vmatpush1.bf16.msra.mxu0 %v2649_v23  ;;  %v2687_v49 = vld [vmem:[%s3395_s17 + $0x13c] ss:$12 sps:$4 sm:$0xff]   ;;  %v2693_v53 = vld [vmem:[%s3395_s17 + $0x124] ss:$12 sps:$4 sm:$0xff]   ;;  %v2697_v55 = vld [vmem:[%s3395_s17 + $0x120] ss:$12 sps:$4 sm:$0xff]  }
  0x9a   : > { %1714 = vmatpush1.bf16.msra.mxu1 %v2650_v24  ;;  %1672 = vmatprep.subr.bf16.mxu0 %v2651_v25  ;;  %v2689_v50 = vld [vmem:[%s3395_s17 + $0x2bc] ss:$12 sps:$4 sm:$0xff]   ;;  %v2695_v54 = vld [vmem:[%s3395_s17 + $0x2a4] ss:$12 sps:$4 sm:$0xff]   ;;  %v2698_v56 = vld [vmem:[%s3395_s17 + $0x2a0] ss:$12 sps:$4 sm:$0xff]  }
  0x9b   : > { %1715 = vmatprep.subr.bf16.mxu1 %v2653_v26  ;;  %v336_v57 = vld [vmem:[%s3387_s7] sm:$0xff]  ;;  %v337_v59 = vld [vmem:[%s3387_s7 + $0x8] sm:$0xff]  ;;  %v2709_v5 = vld [vmem:[%s3395_s17 + $0xf0] ss:$12 sps:$4 sm:$0xff]   ;;  %s3803_s22 = sld [smem:[#allocation15_spill]]  ;;  %s2029_s15 = sshll.u32 %s3410_s11, 4  ;;  %s3685_s15 = int_to_ptr.vmem [resolvable:$true] %s2029_s15 }
  0x9c   : > { %v340_v58 = vld [vmem:[%s3387_s7 + $0x20] sm:$0xff]  ;;  %v341_v60 = vld [vmem:[%s3387_s7 + $0x28] sm:$0xff]  ;;  %v2710_v6 = vld [vmem:[%s3395_s17 + $0x270] ss:$12 sps:$4 sm:$0xff]   ;;  %s3804_s5 = sld [smem:[#allocation23_spill]]  ;;  %s2967_s0 = scalar_lea.vmem %s3685_s15, 768 }
  0x9d   : > { %1673 = vmatpush1.bf16.msra.mxu0 %v2655_v27  ;;  %v2699_v61 = vld [vmem:[%s3395_s17 + $0x10c] ss:$12 sps:$4 sm:$0xff]   ;;  %v3472_v62 = vcombine.high %v336_v57, %v340_v58  ;;  %v3475_v0 = vcombine.high %v337_v59, %v341_v60  ;;  %v2703_v1 = vld [vmem:[%s3395_s17 + $0x108] ss:$12 sps:$4 sm:$0xff]   ;;  %v2717_v11 = vld [vmem:[%s3395_s17 + $0xc4] ss:$12 sps:$4 sm:$0xff]   ;;  %v3495_v17 = vcombine.low %v336_v57, %v340_v58  ;;  %v3497_v18 = vcombine.low %v337_v59, %v341_v60  ;;  %p2968_p6 = scmp.ne.s32.totalorder %s3685_s15, %s2967_s0 }
  0x9e   : > { %1716 = vmatpush1.bf16.msra.mxu1 %v2656_v28  ;;  %1674 = vmatprep.subr.bf16.mxu0 %v2657_v29  ;;  %v2701_v63 = vld [vmem:[%s3395_s17 + $0x28c] ss:$12 sps:$4 sm:$0xff]   ;;  %v2704_v2 = vld [vmem:[%s3395_s17 + $0x288] ss:$12 sps:$4 sm:$0xff]   ;;  %v2719_v12 = vld [vmem:[%s3395_s17 + $0x244] ss:$12 sps:$4 sm:$0xff]  }
  0x9f   : > { %1717 = vmatprep.subr.bf16.mxu1 %v2659_v30  ;;  %1696 = vmatprep.mubr.bf16.mxu0 %v3472_v62  ;;  %v2705_v3 = vld [vmem:[%s3395_s17 + $0xf4] ss:$12 sps:$4 sm:$0xff]   ;;  %v2711_v7 = vld [vmem:[%s3395_s17 + $0xdc] ss:$12 sps:$4 sm:$0xff]   ;;  %v2715_v9 = vld [vmem:[%s3395_s17 + $0xd8] ss:$12 sps:$4 sm:$0xff]   ;;  %p2969_p7 = pnand %p2968_p6, %p3347_p13 }
  0xa0   : > { %1739 = vmatprep.mubr.bf16.mxu1 %v3475_v0  ;;  %v2707_v4 = vld [vmem:[%s3395_s17 + $0x274] ss:$12 sps:$4 sm:$0xff]   ;;  %v2713_v8 = vld [vmem:[%s3395_s17 + $0x25c] ss:$12 sps:$4 sm:$0xff]   ;;  %v2716_v10 = vld [vmem:[%s3395_s17 + $0x258] ss:$12 sps:$4 sm:$0xff]  }
  0xa1   : > { %1675 = vmatpush1.bf16.msra.mxu0 %v2661_v31  ;;  %v2721_v13 = vld [vmem:[%s3395_s17 + $0xc0] ss:$12 sps:$4 sm:$0xff]   ;;  %v2723_v19 = vld [vmem:[%s3395_s17 + $0x3a8] ss:$12 sps:$4 sm:$0xff]   ;;  %v2729_v23 = vld [vmem:[%s3395_s17 + $0x390] ss:$12 sps:$4 sm:$0xff]   ;;  %p2970_p3 = pneg %p2969_p7 }
  0xa2   : > { %1718 = vmatpush1.bf16.msra.mxu1 %v2662_v32  ;;  %1676 = vmatprep.subr.bf16.mxu0 %v2663_v33  ;;  %v2722_v14 = vld [vmem:[%s3395_s17 + $0x240] ss:$12 sps:$4 sm:$0xff]   ;;  %v2726_v20 = vld [vmem:[%s3395_s17 + $0x528] ss:$12 sps:$4 sm:$0xff]   ;;  %v2732_v24 = vld [vmem:[%s3395_s17 + $0x510] ss:$12 sps:$4 sm:$0xff]  }
  0xa3   : > { %1719 = vmatprep.subr.bf16.mxu1 %v2665_v34  ;;  %v2725_v15 = vld [vmem:[%s3395_s17 + $0x3ac] ss:$12 sps:$4 sm:$0xff]   ;;  %v2731_v21 = vld [vmem:[%s3395_s17 + $0x394] ss:$12 sps:$4 sm:$0xff]   ;;  %v2737_v25 = vld [vmem:[%s3395_s17 + $0x37c] ss:$12 sps:$4 sm:$0xff]  }
  0xa4   : > { %v2728_v16 = vld [vmem:[%s3395_s17 + $0x52c] ss:$12 sps:$4 sm:$0xff]   ;;  %v2734_v22 = vld [vmem:[%s3395_s17 + $0x514] ss:$12 sps:$4 sm:$0xff]   ;;  %v2740_v26 = vld [vmem:[%s3395_s17 + $0x4fc] ss:$12 sps:$4 sm:$0xff]  }
  0xa5   : > { %1677 = vmatpush1.bf16.msra.mxu0 %v2667_v35  ;;  %v2735_v27 = vld [vmem:[%s3395_s17 + $0x378] ss:$12 sps:$4 sm:$0xff]   ;;  %v2741_v31 = vld [vmem:[%s3395_s17 + $0x360] ss:$12 sps:$4 sm:$0xff]   ;;  %v2747_v35 = vld [vmem:[%s3395_s17 + $0x348] ss:$12 sps:$4 sm:$0xff]  }
  0xa6   : > { %1720 = vmatpush1.bf16.msra.mxu1 %v2668_v36  ;;  %1678 = vmatprep.subr.bf16.mxu0 %v2669_v37  ;;  %v2738_v28 = vld [vmem:[%s3395_s17 + $0x4f8] ss:$12 sps:$4 sm:$0xff]   ;;  %v2744_v32 = vld [vmem:[%s3395_s17 + $0x4e0] ss:$12 sps:$4 sm:$0xff]   ;;  %v2750_v36 = vld [vmem:[%s3395_s17 + $0x4c8] ss:$12 sps:$4 sm:$0xff]  }
  0xa7   : > { %1721 = vmatprep.subr.bf16.mxu1 %v2671_v38  ;;  %v2743_v29 = vld [vmem:[%s3395_s17 + $0x364] ss:$12 sps:$4 sm:$0xff]   ;;  %v2749_v33 = vld [vmem:[%s3395_s17 + $0x34c] ss:$12 sps:$4 sm:$0xff]   ;;  %v2755_v37 = vld [vmem:[%s3395_s17 + $0x334] ss:$12 sps:$4 sm:$0xff]  }
  0xa8   : > { %v2746_v30 = vld [vmem:[%s3395_s17 + $0x4e4] ss:$12 sps:$4 sm:$0xff]   ;;  %v2752_v34 = vld [vmem:[%s3395_s17 + $0x4cc] ss:$12 sps:$4 sm:$0xff]   ;;  %v2758_v38 = vld [vmem:[%s3395_s17 + $0x4b4] ss:$12 sps:$4 sm:$0xff]  }
  0xa9   : > { %1679 = vmatpush1.bf16.msra.mxu0 %v2673_v39  ;;  %v2753_v39 = vld [vmem:[%s3395_s17 + $0x330] ss:$12 sps:$4 sm:$0xff]   ;;  %v2771_v57 = vld [vmem:[%s3395_s17 + $0x468] ss:$12 sps:$4 sm:$0xff]   ;;  %s2387_s18 = smul.u32 384, %s3803_s22  ;;  %s3130_s1 = smov [#allocation8]  }
  0xaa   : > { %1722 = vmatpush1.bf16.msra.mxu1 %v2674_v40  ;;  %1680 = vmatprep.subr.bf16.mxu0 %v2675_v41  ;;  %v2756_v40 = vld [vmem:[%s3395_s17 + $0x4b0] ss:$12 sps:$4 sm:$0xff]   ;;  %v2774_v58 = vld [vmem:[%s3395_s17 + $0x5e8] ss:$12 sps:$4 sm:$0xff]   ;;  %s2971_s21 = sshll.u32 %s3130_s1, 4  ;;  %s2972_s21 = int_to_ptr.vmem [resolvable:$false] %s2971_s21 }
  0xab   : > { %1723 = vmatprep.subr.bf16.mxu1 %v2677_v42  ;;  %v2761_v41 = vld [vmem:[%s3395_s17 + $0x31c] ss:$12 sps:$4 sm:$0xff]   ;;  %v2779_v59 = vld [vmem:[%s3395_s17 + $0x454] ss:$12 sps:$4 sm:$0xff]   ;;  %s3683_s27 = scalar_lea.hbm %s3804_s5, %s2387_s18  ;;  %s2973_s23 = scalar_lea.vmem %s2972_s21, 1536 }
  0xac   : > { %v2764_v42 = vld [vmem:[%s3395_s17 + $0x49c] ss:$12 sps:$4 sm:$0xff]   ;;  %v2782_v60 = vld [vmem:[%s3395_s17 + $0x5d4] ss:$12 sps:$4 sm:$0xff]   ;;  %p2974_p2 = scmp.lt.s32.totalorder %s3685_s15, %s2972_s21  ;;  %p2975_p4 = scmp.lt.s32.totalorder %s2973_s23, %s2967_s0 }
  0xad   : > { %1681 = vmatpush2.bf16.msra.mxu0 %v2679_v43  ;;  %v2759_v43 = vld [vmem:[%s3395_s17 + $0x318] ss:$12 sps:$4 sm:$0xff]  }
  0xae   : > { %1724 = vmatpush2.bf16.msra.mxu1 %v2680_v44  ;;  %1682 = vmatprep.subr.bf16.mxu0 %v2681_v45  ;;  %v2762_v44 = vld [vmem:[%s3395_s17 + $0x498] ss:$12 sps:$4 sm:$0xff]   ;;  %v3528_v45 = vld [vmem:[%s3387_s7 + $0x10] sm:$0xff]  ;;  %p2976_p12 = por %p2975_p4, %p2974_p2 }
  0xaf   : > { %1725 = vmatprep.subr.bf16.mxu1 %v2683_v46  ;;  %v3531_v46 = vld [vmem:[%s3387_s7 + $0x30] sm:$0xff] }
  0xb0   : > { %p2977_p1 = pnand %p2976_p12, %p2970_p3 }
  0xb1   : > { %1683 = vmatpush2.bf16.msra.mxu0 %v2685_v47  ;;  %v3534_v47 = vld [vmem:[%s3387_s7 + $0x18] sm:$0xff] }
  0xb2   : > { %1726 = vmatpush2.bf16.msra.mxu1 %v2686_v48  ;;  %1684 = vmatprep.subr.bf16.mxu0 %v2687_v49  ;;  %v3537_v48 = vld [vmem:[%s3387_s7 + $0x38] sm:$0xff]  ;;  %v2767_v49 = vld [vmem:[%s3395_s17 + $0x304] ss:$12 sps:$4 sm:$0xff]   ;;  %s2013_s7 = scalar_lea.sflag [#allocation4], %s3402_s28 }
  0xb3   : > { %1727 = vmatprep.subr.bf16.mxu1 %v2689_v50  ;;  %v3542_v50 = vcombine.high %v3528_v45, %v3531_v46 }
  0xb5   : > { %1685 = vmatpush2.bf16.msra.mxu0 %v2691_v51  ;;  %v2770_v51 = vld [vmem:[%s3395_s17 + $0x484] ss:$12 sps:$4 sm:$0xff]  }
  0xb6   : > { %1728 = vmatpush2.bf16.msra.mxu1 %v2692_v52  ;;  %1686 = vmatprep.subr.bf16.mxu0 %v2693_v53  ;;  %v3547_v52 = vcombine.high %v3534_v47, %v3537_v48  ;;  %v2765_v53 = vld [vmem:[%s3395_s17 + $0x300] ss:$12 sps:$4 sm:$0xff]  }
  0xb7   : > { %1729 = vmatprep.subr.bf16.mxu1 %v2695_v54  ;;  %v2768_v54 = vld [vmem:[%s3395_s17 + $0x480] ss:$12 sps:$4 sm:$0xff]  }
  0xb9   : > { %1687 = vmatpush2.bf16.msra.mxu0 %v2697_v55  ;;  %v2773_v55 = vld [vmem:[%s3395_s17 + $0x46c] ss:$12 sps:$4 sm:$0xff]  }
  0xba   : > { %1730 = vmatpush2.bf16.msra.mxu1 %v2698_v56  ;;  %1688 = vmatprep.subr.bf16.mxu0 %v2699_v61  ;;  %v2776_v56 = vld [vmem:[%s3395_s17 + $0x5ec] ss:$12 sps:$4 sm:$0xff]   ;;  %v2777_v61 = vld [vmem:[%s3395_s17 + $0x450] ss:$12 sps:$4 sm:$0xff]  }
  0xbb   : > { %1731 = vmatprep.subr.bf16.mxu1 %v2701_v63  ;;  %v2780_v63 = vld [vmem:[%s3395_s17 + $0x5d0] ss:$12 sps:$4 sm:$0xff]  }
  0xbd   : > { %1689 = vmatpush2.bf16.msra.mxu0 %v2703_v1  ;;  %v2785_v1 = vld [vmem:[%s3395_s17 + $0x43c] ss:$12 sps:$4 sm:$0xff]  }
  0xbe   : > { %1732 = vmatpush2.bf16.msra.mxu1 %v2704_v2  ;;  %1690 = vmatprep.subr.bf16.mxu0 %v2705_v3  ;;  %v2788_v2 = vld [vmem:[%s3395_s17 + $0x5bc] ss:$12 sps:$4 sm:$0xff]   ;;  %v2783_v3 = vld [vmem:[%s3395_s17 + $0x438] ss:$12 sps:$4 sm:$0xff]  }
  0xbf   : > { %1733 = vmatprep.subr.bf16.mxu1 %v2707_v4  ;;  %v2786_v4 = vld [vmem:[%s3395_s17 + $0x5b8] ss:$12 sps:$4 sm:$0xff]  }
  0xc1   : > { %1691 = vmatpush2.bf16.msra.mxu0 %v2709_v5  ;;  %v2791_v5 = vld [vmem:[%s3395_s17 + $0x424] ss:$12 sps:$4 sm:$0xff]  }
  0xc2   : > { %1734 = vmatpush2.bf16.msra.mxu1 %v2710_v6  ;;  %1692 = vmatprep.subr.bf16.mxu0 %v2711_v7  ;;  %v2794_v6 = vld [vmem:[%s3395_s17 + $0x5a4] ss:$12 sps:$4 sm:$0xff]   ;;  %v2789_v7 = vld [vmem:[%s3395_s17 + $0x420] ss:$12 sps:$4 sm:$0xff]  }
  0xc3   : > { %1735 = vmatprep.subr.bf16.mxu1 %v2713_v8  ;;  %v2792_v8 = vld [vmem:[%s3395_s17 + $0x5a0] ss:$12 sps:$4 sm:$0xff]  }
  0xc5   : > { %1693 = vmatpush2.bf16.msra.mxu0 %v2715_v9  ;;  %v2797_v9 = vld [vmem:[%s3395_s17 + $0x40c] ss:$12 sps:$4 sm:$0xff]  }
  0xc6   : > { %1736 = vmatpush2.bf16.msra.mxu1 %v2716_v10  ;;  %1694 = vmatprep.subr.bf16.mxu0 %v2717_v11  ;;  %v2800_v10 = vld [vmem:[%s3395_s17 + $0x58c] ss:$12 sps:$4 sm:$0xff]   ;;  %v2795_v11 = vld [vmem:[%s3395_s17 + $0x408] ss:$12 sps:$4 sm:$0xff]  }
  0xc7   : > { %1737 = vmatprep.subr.bf16.mxu1 %v2719_v12  ;;  %v2798_v12 = vld [vmem:[%s3395_s17 + $0x588] ss:$12 sps:$4 sm:$0xff]  }
  0xc9   : > { %1695 = vmatpush2.bf16.msra.mxu0 %v2721_v13  ;;  %v2803_v13 = vld [vmem:[%s3395_s17 + $0x3f4] ss:$12 sps:$4 sm:$0xff]  }
  0xca   : > { %1738 = vmatpush2.bf16.msra.mxu1 %v2722_v14  ;;  %1750 = vmatprep.subr.bf16.mxu0 %v2725_v15  ;;  %v2806_v14 = vld [vmem:[%s3395_s17 + $0x574] ss:$12 sps:$4 sm:$0xff]   ;;  %v2801_v15 = vld [vmem:[%s3395_s17 + $0x3f0] ss:$12 sps:$4 sm:$0xff]  }
  0xcb   : > { %1793 = vmatprep.subr.bf16.mxu1 %v2728_v16  ;;  %v2804_v16 = vld [vmem:[%s3395_s17 + $0x570] ss:$12 sps:$4 sm:$0xff]  }
  0xcc   : > { %1697 = vmatmul.mubr.bf16.vlgmr.msra.gmra.mxu0 %v3495_v17 }
  0xcd   : > { %1740 = vmatmul.mubr.bf16.vlgmr.msra.gmra.mxu1 %v3497_v18  ;;  %1751 = vmatpush1.bf16.msra.mxu0 %v2723_v19  ;;  %v2809_v19 = vld [vmem:[%s3395_s17 + $0x3dc] ss:$12 sps:$4 sm:$0xff]  }
  0xce   : > { %1794 = vmatpush1.bf16.msra.mxu1 %v2726_v20  ;;  %1752 = vmatprep.subr.bf16.mxu0 %v2731_v21  ;;  %v2812_v20 = vld [vmem:[%s3395_s17 + $0x55c] ss:$12 sps:$4 sm:$0xff]   ;;  %v2807_v21 = vld [vmem:[%s3395_s17 + $0x3d8] ss:$12 sps:$4 sm:$0xff]  }
  0xcf   : > { %1795 = vmatprep.subr.bf16.mxu1 %v2734_v22  ;;  %1782 = vmatprep.mubr.bf16.mxu0 %v3542_v50  ;;  %v2810_v22 = vld [vmem:[%s3395_s17 + $0x558] ss:$12 sps:$4 sm:$0xff]  }
  0xd0   : > { %1825 = vmatprep.mubr.bf16.mxu1 %v3547_v52 }
  0xd1   : > { %1753 = vmatpush1.bf16.msra.mxu0 %v2729_v23  ;;  %v2815_v23 = vld [vmem:[%s3395_s17 + $0x3c4] ss:$12 sps:$4 sm:$0xff]  }
  0xd2   : > { %1796 = vmatpush1.bf16.msra.mxu1 %v2732_v24  ;;  %1754 = vmatprep.subr.bf16.mxu0 %v2737_v25  ;;  %v2818_v24 = vld [vmem:[%s3395_s17 + $0x544] ss:$12 sps:$4 sm:$0xff]   ;;  %v2813_v25 = vld [vmem:[%s3395_s17 + $0x3c0] ss:$12 sps:$4 sm:$0xff]  }
  0xd3   : > { %1797 = vmatprep.subr.bf16.mxu1 %v2740_v26  ;;  %v2816_v26 = vld [vmem:[%s3395_s17 + $0x540] ss:$12 sps:$4 sm:$0xff]  }
  0xd5   : > { %1755 = vmatpush1.bf16.msra.mxu0 %v2735_v27  ;;  %v2819_v27 = vld [vmem:[%s3395_s17 + $0x170] ss:$12 sps:$4 sm:$0xff]  }
  0xd6   : > { %1798 = vmatpush1.bf16.msra.mxu1 %v2738_v28  ;;  %1756 = vmatprep.subr.bf16.mxu0 %v2743_v29  ;;  %v2820_v28 = vld [vmem:[%s3395_s17 + $0x2f0] ss:$12 sps:$4 sm:$0xff]  }
  0xd7   : > { %1799 = vmatprep.subr.bf16.mxu1 %v2746_v30  ;;  %v2821_v29 = vld [vmem:[%s3395_s17 + $0xb0] ss:$12 sps:$4 sm:$0xff]   ;;  %v3590_v30 = vcombine.low %v3528_v45, %v3531_v46 }
  0xd8   : > { %v2837_v45 = vld [vmem:[%s3395_s17 + $0x50] ss:$12 sps:$4 sm:$0xff]  }
  0xd9   : > { %1757 = vmatpush1.bf16.msra.mxu0 %v2741_v31  ;;  %v3594_v31 = vcombine.low %v3534_v47, %v3537_v48  ;;  %v2838_v46 = vld [vmem:[%s3395_s17 + $0x1d0] ss:$12 sps:$4 sm:$0xff]   ;;  %v2839_v47 = vld [vmem:[%s3395_s17 + $0xf8] ss:$12 sps:$4 sm:$0xff]  }
  0xda   : > { %1800 = vmatpush1.bf16.msra.mxu1 %v2744_v32  ;;  %1758 = vmatprep.subr.bf16.mxu0 %v2749_v33  ;;  %v2822_v32 = vld [vmem:[%s3395_s17 + $0x230] ss:$12 sps:$4 sm:$0xff]   ;;  %v2823_v33 = vld [vmem:[%s3395_s17 + $0x158] ss:$12 sps:$4 sm:$0xff]  }
  0xdb   : > { %1801 = vmatprep.subr.bf16.mxu1 %v2752_v34  ;;  %v2824_v34 = vld [vmem:[%s3395_s17 + $0x2d8] ss:$12 sps:$4 sm:$0xff]  }
  0xdc   : > { %v2840_v48 = vld [vmem:[%s3395_s17 + $0x278] ss:$12 sps:$4 sm:$0xff]  }
  0xdd   : > { %1759 = vmatpush1.bf16.msra.mxu0 %v2747_v35  ;;  %v2825_v35 = vld [vmem:[%s3395_s17 + $0x98] ss:$12 sps:$4 sm:$0xff]  }
  0xde   : > { %1802 = vmatpush1.bf16.msra.mxu1 %v2750_v36  ;;  %1760 = vmatprep.subr.bf16.mxu0 %v2755_v37  ;;  %v2826_v36 = vld [vmem:[%s3395_s17 + $0x218] ss:$12 sps:$4 sm:$0xff]   ;;  %v2827_v37 = vld [vmem:[%s3395_s17 + $0x140] ss:$12 sps:$4 sm:$0xff]  }
  0xdf   : > { %1803 = vmatprep.subr.bf16.mxu1 %v2758_v38  ;;  %v2828_v38 = vld [vmem:[%s3395_s17 + $0x2c0] ss:$12 sps:$4 sm:$0xff]  }
  0xe1   : > { %1761 = vmatpush1.bf16.msra.mxu0 %v2753_v39  ;;  %v2829_v39 = vld [vmem:[%s3395_s17 + $0x80] ss:$12 sps:$4 sm:$0xff]  }
  0xe2   : > { %1804 = vmatpush1.bf16.msra.mxu1 %v2756_v40  ;;  %1762 = vmatprep.subr.bf16.mxu0 %v2761_v41  ;;  %v2830_v40 = vld [vmem:[%s3395_s17 + $0x200] ss:$12 sps:$4 sm:$0xff]   ;;  %v2831_v41 = vld [vmem:[%s3395_s17 + $0x128] ss:$12 sps:$4 sm:$0xff]  }
  0xe3   : > { %1805 = vmatprep.subr.bf16.mxu1 %v2764_v42  ;;  %v2832_v42 = vld [vmem:[%s3395_s17 + $0x2a8] ss:$12 sps:$4 sm:$0xff]  }
  0xe5   : > { %1763 = vmatpush1.bf16.msra.mxu0 %v2759_v43  ;;  %v2833_v43 = vld [vmem:[%s3395_s17 + $0x68] ss:$12 sps:$4 sm:$0xff]  }
  0xe6   : > { %1806 = vmatpush1.bf16.msra.mxu1 %v2762_v44  ;;  %1764 = vmatprep.subr.bf16.mxu0 %v2767_v49  ;;  %v2834_v44 = vld [vmem:[%s3395_s17 + $0x1e8] ss:$12 sps:$4 sm:$0xff]   ;;  %v2841_v49 = vld [vmem:[%s3395_s17 + $0x38] ss:$12 sps:$4 sm:$0xff]  }
  0xe7   : > { %1807 = vmatprep.subr.bf16.mxu1 %v2770_v51  ;;  %v2842_v51 = vld [vmem:[%s3395_s17 + $0x1b8] ss:$12 sps:$4 sm:$0xff]  }
  0xe9   : > { %1765 = vmatpush1.bf16.msra.mxu0 %v2765_v53  ;;  %v2843_v53 = vld [vmem:[%s3395_s17 + $0xe0] ss:$12 sps:$4 sm:$0xff]  }
  0xea   : > { %1808 = vmatpush1.bf16.msra.mxu1 %v2768_v54  ;;  %1766 = vmatprep.subr.bf16.mxu0 %v2773_v55  ;;  %v2844_v54 = vld [vmem:[%s3395_s17 + $0x260] ss:$12 sps:$4 sm:$0xff]  }
  0xeb   : > { %1809 = vmatprep.subr.bf16.mxu1 %v2776_v56  ;;  %v2845_v55 = vld [vmem:[%s3395_s17 + $0x20] ss:$12 sps:$4 sm:$0xff]  }
  0xec   : > { %v2846_v56 = vld [vmem:[%s3395_s17 + $0x1a0] ss:$12 sps:$4 sm:$0xff]  }
  0xed   : > { %1767 = vmatpush2.bf16.msra.mxu0 %v2771_v57  ;;  %v2847_v57 = vld [vmem:[%s3395_s17 + $0xc8] ss:$12 sps:$4 sm:$0xff]  }
  0xee   : > { %1810 = vmatpush2.bf16.msra.mxu1 %v2774_v58  ;;  %1768 = vmatprep.subr.bf16.mxu0 %v2779_v59  ;;  %v2848_v58 = vld [vmem:[%s3395_s17 + $0x248] ss:$12 sps:$4 sm:$0xff]  }
  0xef   : > { %1811 = vmatprep.subr.bf16.mxu1 %v2782_v60  ;;  %v2849_v59 = vld [vmem:[%s3395_s17 + $0x8] ss:$12 sps:$4 sm:$0xff]  }
  0xf0   : > { %v2850_v60 = vld [vmem:[%s3395_s17 + $0x188] ss:$12 sps:$4 sm:$0xff]  }
  0xf1   : > { %1769 = vmatpush2.bf16.msra.mxu0 %v2777_v61  ;;  %v2851_v61 = vld [vmem:[%s3395_s17 + $0x470] ss:$12 sps:$4 sm:$0xff]  }
  0xf2   : > { %1812 = vmatpush2.bf16.msra.mxu1 %v2780_v63  ;;  %1770 = vmatprep.subr.bf16.mxu0 %v2785_v1  ;;  %v2852_v63 = vld [vmem:[%s3395_s17 + $0x5f0] ss:$12 sps:$4 sm:$0xff]  }
  0xf3   : > { %1813 = vmatprep.subr.bf16.mxu1 %v2788_v2  ;;  %v2853_v1 = vld [vmem:[%s3395_s17 + $0x3b0] ss:$12 sps:$4 sm:$0xff]  }
  0xf4   : > { %v2854_v2 = vld [vmem:[%s3395_s17 + $0x530] ss:$12 sps:$4 sm:$0xff]  }
  0xf5   : > { %1771 = vmatpush2.bf16.msra.mxu0 %v2783_v3  ;;  %v2855_v3 = vld [vmem:[%s3395_s17 + $0x458] ss:$12 sps:$4 sm:$0xff]  }
  0xf6   : > { %1814 = vmatpush2.bf16.msra.mxu1 %v2786_v4  ;;  %1772 = vmatprep.subr.bf16.mxu0 %v2791_v5  ;;  %v2856_v4 = vld [vmem:[%s3395_s17 + $0x5d8] ss:$12 sps:$4 sm:$0xff]  }
  0xf7   : > { %1815 = vmatprep.subr.bf16.mxu1 %v2794_v6  ;;  %v2857_v5 = vld [vmem:[%s3395_s17 + $0x398] ss:$12 sps:$4 sm:$0xff]  }
  0xf8   : > { %v2858_v6 = vld [vmem:[%s3395_s17 + $0x518] ss:$12 sps:$4 sm:$0xff]  }
  0xf9   : > { %1773 = vmatpush2.bf16.msra.mxu0 %v2789_v7  ;;  %v2859_v7 = vld [vmem:[%s3395_s17 + $0x440] ss:$12 sps:$4 sm:$0xff]  }
  0xfa   : > { %1816 = vmatpush2.bf16.msra.mxu1 %v2792_v8  ;;  %1774 = vmatprep.subr.bf16.mxu0 %v2797_v9  ;;  %v2860_v8 = vld [vmem:[%s3395_s17 + $0x5c0] ss:$12 sps:$4 sm:$0xff]   ;;  %v2863_v9 = vld [vmem:[%s3395_s17 + $0x428] ss:$12 sps:$4 sm:$0xff]  }
  0xfb   : > { %1817 = vmatprep.subr.bf16.mxu1 %v2800_v10  ;;  %v2864_v10 = vld [vmem:[%s3395_s17 + $0x5a8] ss:$12 sps:$4 sm:$0xff]  }
  0xfd   : > { %1775 = vmatpush2.bf16.msra.mxu0 %v2795_v11  ;;  %v2865_v11 = vld [vmem:[%s3395_s17 + $0x368] ss:$12 sps:$4 sm:$0xff]  }
  0xfe   : > { %1818 = vmatpush2.bf16.msra.mxu1 %v2798_v12  ;;  %1776 = vmatprep.subr.bf16.mxu0 %v2803_v13  ;;  %v2868_v12 = vld [vmem:[%s3395_s17 + $0x590] ss:$12 sps:$4 sm:$0xff]  }
  0xff   : > { %1819 = vmatprep.subr.bf16.mxu1 %v2806_v14  ;;  %v2869_v13 = vld [vmem:[%s3395_s17 + $0x350] ss:$12 sps:$4 sm:$0xff]  }
 0x100   : > { %v2870_v14 = vld [vmem:[%s3395_s17 + $0x4d0] ss:$12 sps:$4 sm:$0xff]  }
 0x101   : > { %1777 = vmatpush2.bf16.msra.mxu0 %v2801_v15  ;;  %v2871_v15 = vld [vmem:[%s3395_s17 + $0x3f8] ss:$12 sps:$4 sm:$0xff]  }
 0x102   : > { %1820 = vmatpush2.bf16.msra.mxu1 %v2804_v16  ;;  %1778 = vmatprep.subr.bf16.mxu0 %v2809_v19  ;;  %v2872_v16 = vld [vmem:[%s3395_s17 + $0x578] ss:$12 sps:$4 sm:$0xff]  }
 0x103   : > { %1821 = vmatprep.subr.bf16.mxu1 %v2812_v20  ;;  %v2873_v19 = vld [vmem:[%s3395_s17 + $0x338] ss:$12 sps:$4 sm:$0xff]  }
 0x104   : > { %v2874_v20 = vld [vmem:[%s3395_s17 + $0x4b8] ss:$12 sps:$4 sm:$0xff]  }
 0x105   : > { %1779 = vmatpush2.bf16.msra.mxu0 %v2807_v21  ;;  %v2875_v21 = vld [vmem:[%s3395_s17 + $0x3e0] ss:$12 sps:$4 sm:$0xff]  }
 0x106   : > { %1822 = vmatpush2.bf16.msra.mxu1 %v2810_v22  ;;  %1780 = vmatprep.subr.bf16.mxu0 %v2815_v23  ;;  %v2876_v22 = vld [vmem:[%s3395_s17 + $0x560] ss:$12 sps:$4 sm:$0xff]  }
 0x107   : > { %1823 = vmatprep.subr.bf16.mxu1 %v2818_v24  ;;  %v2877_v23 = vld [vmem:[%s3395_s17 + $0x320] ss:$12 sps:$4 sm:$0xff]  }
 0x108   : > { %v2878_v24 = vld [vmem:[%s3395_s17 + $0x4a0] ss:$12 sps:$4 sm:$0xff]  }
 0x109   : > { %1781 = vmatpush2.bf16.msra.mxu0 %v2813_v25  ;;  %v2879_v25 = vld [vmem:[%s3395_s17 + $0x3c8] ss:$12 sps:$4 sm:$0xff]  }
 0x10a   : > { %1824 = vmatpush2.bf16.msra.mxu1 %v2816_v26  ;;  %2388 = vmatprep.subr.bf16.mxu0 %v2819_v27  ;;  %v2880_v26 = vld [vmem:[%s3395_s17 + $0x548] ss:$12 sps:$4 sm:$0xff]  }
 0x10b   : > { %2410 = vmatprep.subr.bf16.mxu1 %v2820_v28  ;;  %v2881_v27 = vld [vmem:[%s3395_s17 + $0x308] ss:$12 sps:$4 sm:$0xff]  }
 0x10c   : > { %1783 = vmatmul.mubr.bf16.vlgmr.msra.gmra.mxu0 %v3590_v30  ;;  %v2882_v28 = vld [vmem:[%s3395_s17 + $0x488] ss:$12 sps:$4 sm:$0xff]  }
 0x10d   : > { %1826 = vmatmul.mubr.bf16.vlgmr.msra.gmra.mxu1 %v3594_v31  ;;  %2389 = vmatpush3.bf16.msra.mxu0 %v2821_v29 }
 0x10e   : > { %2411 = vmatpush3.bf16.msra.mxu1 %v2822_v32  ;;  %2390 = vmatprep.subr.bf16.mxu0 %v2823_v33 }
 0x10f   : > { %2412 = vmatprep.subr.bf16.mxu1 %v2824_v34  ;;  %1868 = vmatprep.mubr.bf16.mxu0 %v3472_v62  ;;  %v2835_v62 = vld [vmem:[%s3395_s17 + $0x110] ss:$12 sps:$4 sm:$0xff]  }
 0x110   : > { %1909 = vmatprep.mubr.bf16.mxu1 %v3475_v0  ;;  %v2836_v0 = vld [vmem:[%s3395_s17 + $0x290] ss:$12 sps:$4 sm:$0xff]  }
 0x111   : > { %2391 = vmatpush3.bf16.msra.mxu0 %v2825_v35 }
 0x112   : > { %2413 = vmatpush3.bf16.msra.mxu1 %v2826_v36  ;;  %2392 = vmatprep.subr.bf16.mxu0 %v2827_v37 }
 0x113   : > { %2414 = vmatprep.subr.bf16.mxu1 %v2828_v38 }
 0x115   : > { %2393 = vmatpush3.bf16.msra.mxu0 %v2829_v39 }
 0x116   : > { %2415 = vmatpush3.bf16.msra.mxu1 %v2830_v40  ;;  %2394 = vmatprep.subr.bf16.mxu0 %v2831_v41 }
 0x117   : > { %2416 = vmatprep.subr.bf16.mxu1 %v2832_v42 }
 0x119   : > { %2395 = vmatpush3.bf16.msra.mxu0 %v2833_v43 }
 0x11a   : > { %2417 = vmatpush3.bf16.msra.mxu1 %v2834_v44  ;;  %2396 = vmatprep.subr.bf16.mxu0 %v2835_v62  ;;  %v330_v44 = vld [vmem:[%s3410_s11] sm:$0xff] }
 0x11b   : > { %2418 = vmatprep.subr.bf16.mxu1 %v2836_v0 }
 0x11d   : > { %2397 = vmatpush3.bf16.msra.mxu0 %v2837_v45 }
 0x11e   : > { %2419 = vmatpush3.bf16.msra.mxu1 %v2838_v46  ;;  %2398 = vmatprep.subr.bf16.mxu0 %v2839_v47  ;;  %v331_v46 = vld [vmem:[%s3410_s11 + $0x8] sm:$0xff] }
 0x11f   : > { %2420 = vmatprep.subr.bf16.mxu1 %v2840_v48 }
 0x121   : > { %2399 = vmatpush3.bf16.msra.mxu0 %v2841_v49 }
 0x122   : > { %2421 = vmatpush3.bf16.msra.mxu1 %v2842_v51  ;;  %2400 = vmatprep.subr.bf16.mxu0 %v2843_v53 }
 0x123   : > { %2422 = vmatprep.subr.bf16.mxu1 %v2844_v54 }
 0x125   : > { %2401 = vmatpush3.bf16.msra.mxu0 %v2845_v55  ;;  %v333_v55 = vld [vmem:[%s3410_s11 + $0x18] sm:$0xff] }
 0x126   : > { %2423 = vmatpush3.bf16.msra.mxu1 %v2846_v56  ;;  %2402 = vmatprep.subr.bf16.mxu0 %v2847_v57 }
 0x127   : > { %2424 = vmatprep.subr.bf16.mxu1 %v2848_v58 }
 0x129   : > { %2403 = vmatpush3.bf16.msra.mxu0 %v2849_v59 }
 0x12a   : > { %2425 = vmatpush3.bf16.msra.mxu1 %v2850_v60  ;;  %2432 = vmatprep.subr.bf16.mxu0 %v2851_v61  ;;  %v334_v60 = vld [vmem:[%s3410_s11 + $0x20] sm:$0xff] }
 0x12b   : > { %2454 = vmatprep.subr.bf16.mxu1 %v2852_v63 }
 0x12c   : > { %1869 = vmatmul.mubr.bf16.vlgmr.msra.gmra.mxu0 %v3495_v17  ;;  %v2861_v17 = vld [vmem:[%s3395_s17 + $0x380] ss:$12 sps:$4 sm:$0xff]  }
 0x12d   : > { %1910 = vmatmul.mubr.bf16.vlgmr.msra.gmra.mxu1 %v3497_v18  ;;  %2433 = vmatpush3.bf16.msra.mxu0 %v2853_v1  ;;  %v2862_v18 = vld [vmem:[%s3395_s17 + $0x500] ss:$12 sps:$4 sm:$0xff]  }
 0x12e   : > { %2455 = vmatpush3.bf16.msra.mxu1 %v2854_v2  ;;  %2434 = vmatprep.subr.bf16.mxu0 %v2855_v3 }
 0x12f   : > { %2456 = vmatprep.subr.bf16.mxu1 %v2856_v4  ;;  %1950 = vmatprep.mubr.bf16.mxu0 %v3542_v50  ;;  %v2866_v50 = vld [vmem:[%s3395_s17 + $0x4e8] ss:$12 sps:$4 sm:$0xff]  }
 0x130   : > { %1991 = vmatprep.mubr.bf16.mxu1 %v3547_v52  ;;  %v2867_v52 = vld [vmem:[%s3395_s17 + $0x410] ss:$12 sps:$4 sm:$0xff]  }
 0x131   : > { %2435 = vmatpush3.bf16.msra.mxu0 %v2857_v5 }
 0x132   : > { %2457 = vmatpush3.bf16.msra.mxu1 %v2858_v6  ;;  %2436 = vmatprep.subr.bf16.mxu0 %v2859_v7 }
 0x133   : > { %2458 = vmatprep.subr.bf16.mxu1 %v2860_v8 }
 0x135   : > { %2437 = vmatpush3.bf16.msra.mxu0 %v2861_v17 }
 0x136   : > { %2459 = vmatpush3.bf16.msra.mxu1 %v2862_v18  ;;  %2438 = vmatprep.subr.bf16.mxu0 %v2863_v9 }
 0x137   : > { %2460 = vmatprep.subr.bf16.mxu1 %v2864_v10 }
 0x139   : > { %2439 = vmatpush3.bf16.msra.mxu0 %v2865_v11 }
 0x13a   : > { %2461 = vmatpush3.bf16.msra.mxu1 %v2866_v50  ;;  %2440 = vmatprep.subr.bf16.mxu0 %v2867_v52 }
 0x13b   : > { %2462 = vmatprep.subr.bf16.mxu1 %v2868_v12 }
 0x13d   : > { %2441 = vmatpush3.bf16.msra.mxu0 %v2869_v13 }
 0x13e   : > { %2463 = vmatpush3.bf16.msra.mxu1 %v2870_v14  ;;  %2442 = vmatprep.subr.bf16.mxu0 %v2871_v15 }
 0x13f   : > { %2464 = vmatprep.subr.bf16.mxu1 %v2872_v16 }
 0x141   : > { %2443 = vmatpush3.bf16.msra.mxu0 %v2873_v19 }
 0x142   : > { %2465 = vmatpush3.bf16.msra.mxu1 %v2874_v20  ;;  %2444 = vmatprep.subr.bf16.mxu0 %v2875_v21 }
 0x143   : > { %2466 = vmatprep.subr.bf16.mxu1 %v2876_v22 }
 0x145   : > { %2445 = vmatpush3.bf16.msra.mxu0 %v2877_v23  ;;  %v332_v23 = vld [vmem:[%s3410_s11 + $0x10] sm:$0xff] }
 0x146   : > { %2467 = vmatpush3.bf16.msra.mxu1 %v2878_v24  ;;  %2446 = vmatprep.subr.bf16.mxu0 %v2879_v25 }
 0x147   : > { %2468 = vmatprep.subr.bf16.mxu1 %v2880_v26 }
 0x149   : > { %2447 = vmatpush3.bf16.msra.mxu0 %v2881_v27 }
 0x14a   : > { %2469 = vmatpush3.bf16.msra.mxu1 %v2882_v28 }
 0x14c   : > { %1951 = vmatmul.mubr.bf16.vlgmr.msra.gmra.mxu0 %v3590_v30 }
 0x14d   : > { %1992 = vmatmul.mubr.bf16.vlgmr.msra.gmra.mxu1 %v3594_v31 }
 0x18c   : > { %v1698_v29 = vpop.f32.mrf.mxu0 }
 0x18d   : > { %v1741_v32 = vpop.f32.mrf.mxu1 }
 0x18e   : > { %v1700_v33 = vpop.f32.mrf.mxu0  ;;  %v1742_v39 = vadd.f32 %v1741_v32, %v1698_v29 }
 0x18f   : > { %v1743_v34 = vpop.f32.mrf.mxu1 }
 0x190   : > { %v1702_v35 = vpop.f32.mrf.mxu0  ;;  %v1744_v42 = vadd.f32 %v1743_v34, %v1700_v33  ;;  %v335_v34 = vld [vmem:[%s3410_s11 + $0x28] sm:$0xff] }
 0x191   : > { %v1745_v36 = vpop.f32.mrf.mxu1 }
 0x192   : > { %v1704_v37 = vpop.f32.mrf.mxu0  ;;  %v1746_v31 = vadd.f32 %v1745_v36, %v1702_v35 }
 0x193   : > { %v1747_v38 = vpop.f32.mrf.mxu1 }
 0x194   : > { %v1748_v49 = vadd.f32 %v1747_v38, %v1704_v37 }
 0x1cc   : > { %v1784_v40 = vpop.f32.mrf.mxu0 }
 0x1cd   : > { %v1827_v41 = vpop.f32.mrf.mxu1  ;;  %v1785_v43 = vadd.f32 %v1784_v40, %v1742_v39 }
 0x1ce   : > { %v1786_v30 = vpop.f32.mrf.mxu0 }
 0x1cf   : > { %v1829_v62 = vpop.f32.mrf.mxu1  ;;  %v1828_v0 = vadd.f32 %v1827_v41, %v1785_v43  ;;  %v1787_v45 = vadd.f32 %v1786_v30, %v1744_v42 }
 0x1d0   : > { %v1788_v47 = vpop.f32.mrf.mxu0 }
 0x1d1   : > { %v1831_v48 = vpop.f32.mrf.mxu1  ;;  %v2000_v51 = vadd.f32 %v1828_v0, %v330_v44  ;;  %v1830_v53 = vadd.f32 %v1829_v62, %v1787_v45  ;;  %v1789_v54 = vadd.f32 %v1788_v47, %v1746_v31 }
 0x1d2   : > { %v1790_v56 = vpop.f32.mrf.mxu0 }
 0x1d3   : > { %2006 = vst [vmem:[%s3410_s11] sm:$0xff] %v2000_v51  ;;  %v2001_v57 = vadd.f32 %v1830_v53, %v331_v46  ;;  %v1832_v58 = vadd.f32 %v1831_v48, %v1789_v54  ;;  %v1791_v59 = vadd.f32 %v1790_v56, %v1748_v49  ;;  %v1833_v61 = vpop.f32.mrf.mxu1 }
 0x1d5   : > { %2007 = vst [vmem:[%s3410_s11 + $0x8] sm:$0xff] %v2001_v57  ;;  %v2003_v63 = vadd.f32 %v1832_v58, %v333_v55  ;;  %v1834_v1 = vadd.f32 %v1833_v61, %v1791_v59 }
 0x1d7   : > { %2009 = vst [vmem:[%s3410_s11 + $0x18] sm:$0xff] %v2003_v63  ;;  %v2004_v2 = vadd.f32 %v1834_v1, %v334_v60 }
 0x1d9   : > { %2010 = vst [vmem:[%s3410_s11 + $0x20] sm:$0xff] %v2004_v2 }
 0x1ec   : > { %v2404_v3 = vpop.f32.mrf.mxu0 }
 0x1ed   : > { %v2426_v4 = vpop.f32.mrf.mxu1 }
 0x1ee   : > { %v2405_v5 = vpop.f32.mrf.mxu0 }
 0x1ef   : > { %v2427_v6 = vpop.f32.mrf.mxu1  ;;  %v2406_v9 = vadd.f32 %v2405_v5, %v2404_v3 }
 0x1f0   : > { %v2407_v7 = vpop.f32.mrf.mxu0  ;;  %v2428_v10 = vadd.f32 %v2427_v6, %v2426_v4 }
 0x1f1   : > { %v2429_v8 = vpop.f32.mrf.mxu1 }
 0x1f2   : > { %v2408_v17 = vpop.f32.mrf.mxu0  ;;  %v1912_v13 = vadd.f32 %v2428_v10, %v2406_v9 }
 0x1f3   : > { %v2430_v18 = vpop.f32.mrf.mxu1  ;;  %v2409_v14 = vadd.f32 %v2408_v17, %v2407_v7 }
 0x1f4   : > { %v2431_v15 = vadd.f32 %v2430_v18, %v2429_v8 }
 0x1f6   : > { %v1915_v26 = vadd.f32 %v2431_v15, %v2409_v14 }
 0x20c   : > { %v2448_v11 = vpop.f32.mrf.mxu0 }
 0x20d   : > { %v2470_v50 = vpop.f32.mrf.mxu1 }
 0x20e   : > { %v2449_v52 = vpop.f32.mrf.mxu0 }
 0x20f   : > { %v2471_v12 = vpop.f32.mrf.mxu1  ;;  %v2450_v16 = vadd.f32 %v2449_v52, %v2448_v11 }
 0x210   : > { %v2451_v19 = vpop.f32.mrf.mxu0  ;;  %v2472_v22 = vadd.f32 %v2471_v12, %v2470_v50 }
 0x211   : > { %v2473_v20 = vpop.f32.mrf.mxu1  ;;  %v1953_v21 = vadd.f32 %v2450_v16, %v1912_v13 }
 0x212   : > { %v2452_v24 = vpop.f32.mrf.mxu0 }
 0x213   : > { %v2474_v25 = vpop.f32.mrf.mxu1  ;;  %v1994_v27 = vadd.f32 %v2472_v22, %v1953_v21  ;;  %v2453_v28 = vadd.f32 %v2452_v24, %v2451_v19 }
 0x214   : > { %v2475_v33 = vadd.f32 %v2474_v25, %v2473_v20 }
 0x215   : > { %v2002_v29 = vadd.f32 %v1994_v27, %v332_v23  ;;  %v1956_v32 = vadd.f32 %v2453_v28, %v1915_v26 }
 0x217   : > { %2008 = vst [vmem:[%s3410_s11 + $0x10] sm:$0xff] %v2002_v29  ;;  %v1997_v35 = vadd.f32 %v2475_v33, %v1956_v32 }
 0x219   : > { %v2005_v36 = vadd.f32 %v1997_v35, %v335_v34 }
 0x21b   : > { %2011 = vst [vmem:[%s3410_s11 + $0x28] sm:$0xff] %v2005_v36 }
 0x21c   : > { %2980 = shalt.err (!%p2977_p1)
}
 0x21d   : > { %s2981_s17 = scalar_lea.hbm %s3683_s27, 768  ;;  %s2985_s6 = scalar_lea.hbm %s3804_s5, 1536 }
 0x21e   : > { %p2982_p9 = scmp.ne.s32.totalorder %s3683_s27, %s2981_s17  ;;  %p2986_p0 = scmp.lt.s32.totalorder %s3683_s27, %s3804_s5 }
 0x21f   : > { %p2987_p5 = scmp.lt.s32.totalorder %s2985_s6, %s2981_s17 }
 0x220   : > { %p2983_p11 = pnand %p2982_p9, %p3347_p13 }
 0x221   : > { %p2988_p10 = por %p2987_p5, %p2986_p0 }
 0x222   : > { %p2984_p8 = pneg %p2983_p11 }
 0x224   : > { %p2989_p6 = pnand %p2988_p10, %p2984_p8 }
 0x226   : > { %2992 = shalt.err (!%p2989_p6)
}
 0x227   : > { %s3131_s22 = smov 384   ;;  %s3132_s18 = smov 768  }
 0x228   : > { %s3133_s30 = smov 24  }
 0x229   : > { %2488 = dma.vmem_to_hbm [thread:$0]  (%p3347_p13), %s3685_s15, 768, %s3683_s27, %s2013_s7, %s3131_s22, %s3132_s18, %s3133_s30  }
 0x22a PF: > { %p2505_p7 = scmp.ge.s32.totalorder %s3119_s25, 2  ;;  %s2044_s9 = sand.u32 1, %s3067_s12  }
 0x22b   : > { %p3805_p3 = scmp.ne.s32.totalorder %s3800_s29, 0  ;;  %s2045_s0 = scalar_lea.sflag [#allocation4], %s2044_s9 }
 0x22d   : > { %p2501_p2 = pnand %p2505_p7, %p3805_p3 }
 0x22f   : > { %p2502_p4 = pneg %p2501_p2 }
 0x231   : > { %3062 = dma.done.wait (%p2502_p4), %s2045_s0, 768  }
 0x232   : > { %3064 = vsyncadd (%p2502_p4), %s2045_s0, 4294966528  ;;  %s22_s25 = sadd.s32 1, %s3119_s25   ;;  %s3807_s26 = sld [smem:[#allocation13_spill]] }
 0x233   : > { %p3716_p12 = scmp.ge.s32.totalorder %s22_s25, 6   ;;  %s3808_s29 = sld [smem:[#allocation18_spill]] }
 0x234   : > { %s3809_s21 = sld [smem:[#allocation16_spill]]  ;;  %s3812_s12 = smov %s3071_s13 }
 0x235   : > { %s3810_s23 = sld [smem:[#allocation17_spill]]  ;;  %s3813_s13 = smov %s3075_s14 }
 0x236   : > { %s3811_s28 = sld [smem:[#allocation19_spill]]  ;;  %s3814_s14 = smov %s3352_s8 }
 0x237   : > { %s3815_s15 = smov %s3083_s16  ;;  %s3817_s17 = smov %s3830_s10 }
 0x238   : > { %s3816_s16 = smov %s3807_s26  ;;  %s3818_s18 = smov %s3095_s19 }
 0x239   : > { %s3819_s19 = smov %s3099_s20  ;;  %s3820_s20 = smov %s3808_s29 }
 0x23a   : > { %s3821_s22 = smov %s3115_s24  ;;  %21 = sbr.rel (!%p3716_p12) target bundleno = 17 (0x11), region = 105 }
 0x23c   : > { %s3822_s24 = smov %s3811_s28 }
 0x23f   :  { %2050 = vsyncpa [#allocation3], 1 }
 0x240   :  { %2052 = vsyncpa [#allocation3 + $0x1], 1 }
 0x241   :  { %2053 = vsyncpa [#allocation6], 1 }
 0x242   :  { %2055 = vsyncpa [#allocation6 + $0x1], 1 }
 0x243   :  { %2056 = vsyncpa [#allocation4], 1 }
 0x244   :  { %2058 = vsyncpa [#allocation4 + $0x1], 1 }

</bundles_post_ra>
